<compile_context>
chip_gen: v7x
topology: tpu7x:2x2x1
jax: 0.10.0
libtpu: 0.0.40
codegen_flags: <defaults>
</compile_context>

<pallas_src>
import functools

import jax
import jax.numpy as jnp
from jax.experimental import pallas as pl
from jax.experimental.pallas import tpu as pltpu


_R, _G, _B = 0.299, 0.587, 0.114


def _gray_kernel_split(r_ref, g_ref, b_ref, o_ref):
    # Each ref: (tn, t_hw). Cast per channel -> no (tn, 3*hw) f32 temporary.
    r = r_ref[...].astype(jnp.float32)
    g = g_ref[...].astype(jnp.float32)
    b = b_ref[...].astype(jnp.float32)
    o_ref[...] = (_R * r + _G * g + _B * b).astype(o_ref.dtype)


def _gray_kernel_wide(x_ref, o_ref, *, hw):
    # Fallback: x_ref is (tn, in_lanes) with channels contiguous along lanes.
    r = x_ref[:, 0 * hw:1 * hw].astype(jnp.float32)
    g = x_ref[:, 1 * hw:2 * hw].astype(jnp.float32)
    b = x_ref[:, 2 * hw:3 * hw].astype(jnp.float32)
    o_ref[...] = (_R * r + _G * g + _B * b).astype(o_ref.dtype)


def _round_down(x, m):
    return (x // m) * m


def _pick_tn(n, bytes_per_row_step, row_mult, target_bytes, cap_block_bytes):
    """Rows per grid step: ~target_bytes of HBM traffic per step, capped by the
    VMEM block budget, rounded to the packed-sublane multiple, and split into
    >= 2 steps when the batch is large enough (v7x has 2 TensorCores)."""
    tn = max(1, target_bytes // bytes_per_row_step)
    tn = min(tn, max(1, cap_block_bytes // bytes_per_row_step))
    if tn >= n:
        tn = n
    else:
        tn = max(row_mult, _round_down(tn, row_mult))
    if n >= 2 * row_mult:
        half = max(row_mult, _round_down((n + 1) // 2, row_mult))
        tn = min(tn, half)
    return min(tn, n)


def gray_layer(x, *, target_bytes_per_step=8 * 1024 * 1024):
    """x: (N, C, H, W) with C >= 3. Returns (N, 1, H, W)."""
    N, C, H, W = x.shape
    assert C >= 3, "GrayLayer requires at least 3 channels"
    hw = H * W
    itemsize = jnp.dtype(x.dtype).itemsize
    row_mult = 8 * max(1, 4 // itemsize)          # 8 f32 / 16 bf16 / 32 int8-fp8
    cap_block_bytes = 12 * 1024 * 1024            # per-step blocks; 2x-buffered <= 24 MiB

    x2 = x.reshape(N, C * hw)                     # free metadata reshape

    if hw % 128 == 0:
        # ---- Per-channel blocks on the flat view (channels >= 3 never DMA'd). ----
        # Lane tile: largest multiple of 128 dividing hw such that a
        # row_mult-high step (3 inputs + 1 output) fits the VMEM budget.
        m = hw // 128
        t_hw = 128
        for k in range(1, m + 1):
            if m % k == 0:
                cand = 128 * (m // k)
                if row_mult * 4 * cand * itemsize <= cap_block_bytes:
                    t_hw = cand
                    break
        hwb = hw // t_hw                          # lane blocks per channel
        bytes_per_row_step = 4 * t_hw * itemsize  # 3 channels in + 1 out
        tn = _pick_tn(N, bytes_per_row_step, row_mult,
                      target_bytes_per_step, cap_block_bytes)
        grid = (pl.cdiv(N, tn), hwb)

        def chan_map(n, h, *, c):
            return (n, c * hwb + h)               # lane offset = c*hw + h*t_hw

        in_specs = [
            pl.BlockSpec((tn, t_hw), functools.partial(chan_map, c=c))
            for c in range(3)
        ]
        out_spec = pl.BlockSpec((tn, t_hw), lambda n, h: (n, h))
        kernel = _gray_kernel_split
        operands = (x2, x2, x2)
        in_block_bytes = 3 * tn * t_hw * itemsize
        out_block_bytes = tn * t_hw * itemsize
        dim_sem = ("parallel", "arbitrary")
    else:
        # ---- Fallback: one wide block per row tile. ----
        if C == 3 or (3 * hw) % 128 == 0:
            in_lanes = 3 * hw                     # skip channels >= 3
        else:
            in_lanes = C * hw                     # full rows keep the block legal
        bytes_per_row_step = (in_lanes + hw) * itemsize
        tn = _pick_tn(N, bytes_per_row_step, row_mult,
                      target_bytes_per_step, cap_block_bytes)
        grid = (pl.cdiv(N, tn),)
        in_specs = [pl.BlockSpec((tn, in_lanes), lambda n: (n, 0))]
        out_spec = pl.BlockSpec((tn, hw), lambda n: (n, 0))
        kernel = functools.partial(_gray_kernel_wide, hw=hw)
        operands = (x2,)
        in_block_bytes = tn * in_lanes * itemsize
        out_block_bytes = tn * hw * itemsize
        dim_sem = ("parallel",)

    # Explicit scoped-VMEM request: 2 buffers x (in + out) + headroom, clamped so
    # it stays inside every generation's budget (v5e default 16 MiB, v7x 64 MiB phys).
    vmem_limit = 2 * (in_block_bytes + out_block_bytes) + (4 << 20)
    vmem_limit = int(min(max(vmem_limit, 16 << 20), 48 << 20))

    out2 = pl.pallas_call(
        kernel,
        out_shape=jax.ShapeDtypeStruct((N, hw), x.dtype),
        grid_spec=pltpu.PrefetchScalarGridSpec(
            num_scalar_prefetch=0,
            grid=grid,
            in_specs=in_specs,
            out_specs=out_spec,
        ),
        compiler_params=pltpu.CompilerParams(
            dimension_semantics=dim_sem,
            vmem_limit_bytes=vmem_limit,
        ),
    )(*operands)

    return out2.reshape(N, 1, H, W)


if __name__ == "__main__":
    key = jax.random.PRNGKey(0)
    # N=2, C=4 (extra channel must be ignored, matching PyTorch), H=W=16.
    x = jax.random.normal(key, (2, 4, 16, 16), dtype=jnp.float32)

    out = gray_layer(x)
    jax.block_until_ready(out)

    # Reference check in plain JAX.
    ref = (0.299 * x[:, 0] + 0.587 * x[:, 1] + 0.114 * x[:, 2])[:, None]
    assert out.shape == (2, 1, 16, 16)
    assert jnp.allclose(out, ref, atol=1e-5, rtol=1e-5)

    print("KERNEL_OK")
</pallas_src>

<mosaic_0001>
module attributes {stable_mosaic.version = 11 : i64} {
  func.func @_gray_kernel_split(%arg0: i32, %arg1: i32, %arg2: memref<2x256xf32, #tpu.memory_space<vmem>>, %arg3: memref<2x256xf32, #tpu.memory_space<vmem>>, %arg4: memref<2x256xf32, #tpu.memory_space<vmem>>, %arg5: memref<2x256xf32, #tpu.memory_space<vmem>>) attributes {dimension_semantics = [#tpu.dimension_semantics<parallel>, #tpu.dimension_semantics<arbitrary>], iteration_bounds = array<i64: 1, 1>, scalar_prefetch = 0 : i64, scratch_operands = 0 : i64, tpu.core_type = #tpu.core_type<tc>, window_params = [{transform_indices = @transform_0, window_bounds = array<i64: 2, 256>}, {transform_indices = @transform_1, window_bounds = array<i64: 2, 256>}, {transform_indices = @transform_2, window_bounds = array<i64: 2, 256>}, {transform_indices = @transform_3, window_bounds = array<i64: 2, 256>}]} {
    %c0 = arith.constant 0 : index
    %c0_0 = arith.constant 0 : index
    %0 = vector.load %arg2[%c0, %c0_0] : memref<2x256xf32, #tpu.memory_space<vmem>>, vector<2x256xf32>
    %c0_1 = arith.constant 0 : index
    %c0_2 = arith.constant 0 : index
    %1 = vector.load %arg3[%c0_1, %c0_2] : memref<2x256xf32, #tpu.memory_space<vmem>>, vector<2x256xf32>
    %c0_3 = arith.constant 0 : index
    %c0_4 = arith.constant 0 : index
    %2 = vector.load %arg4[%c0_3, %c0_4] : memref<2x256xf32, #tpu.memory_space<vmem>>, vector<2x256xf32>
    %cst = arith.constant 2.990000e-01 : f32
    %3 = vector.broadcast %cst : f32 to vector<2x256xf32>
    %4 = arith.mulf %3, %0 : vector<2x256xf32>
    %cst_5 = arith.constant 5.870000e-01 : f32
    %5 = vector.broadcast %cst_5 : f32 to vector<2x256xf32>
    %6 = arith.mulf %5, %1 : vector<2x256xf32>
    %7 = arith.addf %4, %6 : vector<2x256xf32>
    %cst_6 = arith.constant 1.140000e-01 : f32
    %8 = vector.broadcast %cst_6 : f32 to vector<2x256xf32>
    %9 = arith.mulf %8, %2 : vector<2x256xf32>
    %10 = arith.addf %7, %9 : vector<2x256xf32>
    %c0_7 = arith.constant 0 : index
    %c0_8 = arith.constant 0 : index
    %11 = vector.load %arg5[%c0_7, %c0_8] : memref<2x256xf32, #tpu.memory_space<vmem>>, vector<2x256xf32>
    tpu.vector_store %arg5[%c0_7, %c0_8], %10 {strides = array<i32>} : memref<2x256xf32, #tpu.memory_space<vmem>>, vector<2x256xf32>,
    return
  }
  func.func @transform_0(%arg0: i32, %arg1: i32) -> (i32, i32) {
    %c0_i32 = arith.constant 0 : i32
    %0 = arith.addi %c0_i32, %arg1 : i32
    %c0_i32_0 = arith.constant 0 : i32
    return %arg0, %0 : i32, i32
  }
  func.func @transform_1(%arg0: i32, %arg1: i32) -> (i32, i32) {
    %c1_i32 = arith.constant 1 : i32
    %0 = arith.addi %c1_i32, %arg1 : i32
    %c0_i32 = arith.constant 0 : i32
    return %arg0, %0 : i32, i32
  }
  func.func @transform_2(%arg0: i32, %arg1: i32) -> (i32, i32) {
    %c2_i32 = arith.constant 2 : i32
    %0 = arith.addi %c2_i32, %arg1 : i32
    %c0_i32 = arith.constant 0 : i32
    return %arg0, %0 : i32, i32
  }
  func.func @transform_3(%arg0: i32, %arg1: i32) -> (i32, i32) {
    %c0_i32 = arith.constant 0 : i32
    return %arg0, %arg1 : i32, i32
  }
}

</mosaic_0001>

<bundles_post_ra>
// kernel: tpu_custom_call.1
= control target key start
LH: loop header
LB: loop body
LE: loop exit
PB: predicated region body
PF: predicated region fallthrough
CT: control target
= control target key end

     0   :  { %8 = vsyncpa [#allocation3], 0  ;;  %s268_s0 = inlined_call_operand.hbm [shape: f32[2,1024], index: 0, kind: input, shape index: {}]   ;;  %s269_s1 = inlined_call_operand.hbm [shape: f32[2,1024], index: 1, kind: input, shape index: {}]   ;;  %s270_s2 = inlined_call_operand.hbm [shape: f32[2,1024], index: 2, kind: input, shape index: {}]   ;;  %s271_s3 = inlined_call_operand.hbm [shape: f32[2,256], index: 3, kind: output, shape index: {}]  }
   0x1   :  { %9 = vsyncpa [#allocation6], 0  ;;  %s87_s14 = scalar_lea.hbm %s269_s1, 64 }
   0x2   :  { %10 = vsyncpa [#allocation4], 0  ;;  %s193_s15 = smov [#allocation5]   ;;  %s194_s17 = smov [#allocation2]  }
   0x3   :  { %s31_s16 = sshll.u32 %s193_s15, 4  ;;  %s17_s18 = sshll.u32 %s194_s17, 4  ;;  %s32_s16 = int_to_ptr.vmem [resolvable:$true] %s31_s16  ;;  %s18_s18 = int_to_ptr.vmem [resolvable:$true] %s17_s18 }
   0x4   :  { %s117_s21 = scalar_lea.hbm %s269_s1, 128  ;;  %s95_s24 = scalar_lea.hbm %s269_s1, 256 }
   0x5   :  { %p94_p0 = scmp.ne.s32.totalorder %s87_s14, %s117_s21  ;;  %p96_p1 = scmp.lt.u32.totalorder %s87_s14, %s269_s1 }
   0x6   :  { %p97_p2 = scmp.lt.u32.totalorder %s95_s24, %s117_s21  ;;  %p99_p4 = scmp.lt.u32.totalorder %s117_s21, %s87_s14 }
   0x8   :  { %p98_p3 = por %p97_p2, %p96_p1 }
   0xa   :  { %p100_p5 = por %p99_p4, %p98_p3 }
   0xc   :  { %p101_p6 = pnand %p100_p5, %p94_p0 }
   0xe   :  { %104 = shalt.err (!%p101_p6)
}
   0xf   :  { %s105_s27 = scalar_lea.vmem %s32_s16, 64  ;;  %p110_p8 = scmp.lt.s32.totalorder %s32_s16, %s32_s16 }
  0x10   :  { %p106_p7 = scmp.ne.s32.totalorder %s32_s16, %s105_s27  ;;  %p111_p9 = scmp.lt.s32.totalorder %s105_s27, %s105_s27 }
  0x12   :  { %p112_p10 = por %p111_p9, %p110_p8 }
  0x14   :  { %p113_p11 = pnand %p112_p10, %p106_p7 }
  0x16   :  { %116 = shalt.err (!%p113_p11)
}
  0x17   :  { %34 = dma.hbm_to_vmem [thread:$0]  %s87_s14, 64, %s32_s16, [#allocation6]  }
  0x18   :  { %s118_s30 = scalar_lea.hbm %s268_s0, 64  ;;  %s120_s7 = scalar_lea.hbm %s268_s0, 256 }
  0x19   :  { %p119_p12 = scmp.ne.s32.totalorder %s268_s0, %s118_s30  ;;  %p121_p13 = scmp.lt.u32.totalorder %s120_s7, %s118_s30 }
  0x1a   :  { %p122_p0 = scmp.lt.u32.totalorder %s118_s30, %s268_s0 }
  0x1c   :  { %p123_p1 = por %p122_p0, %p121_p13 }
  0x1e   :  { %p124_p2 = pnand %p123_p1, %p119_p12 }
  0x20   :  { %127 = shalt.err (!%p124_p2)
}
  0x21   :  { %s128_s10 = scalar_lea.vmem %s18_s18, 64  ;;  %p133_p4 = scmp.lt.s32.totalorder %s18_s18, %s18_s18 }
  0x22   :  { %p129_p3 = scmp.ne.s32.totalorder %s18_s18, %s128_s10  ;;  %p134_p5 = scmp.lt.s32.totalorder %s128_s10, %s128_s10 }
  0x24   :  { %p135_p6 = por %p134_p5, %p133_p4 }
  0x26   :  { %p136_p7 = pnand %p135_p6, %p129_p3 }
  0x28   :  { %139 = shalt.err (!%p136_p7)
}
  0x29   :  { %20 = dma.hbm_to_vmem [thread:$0]  %s268_s0, 64, %s18_s18, [#allocation3]  }
  0x2a   :  { %s88_s15 = scalar_lea.hbm %s270_s2, 128  ;;  %s195_s16 = smov [#allocation7]  }
  0x2b   :  { %s45_s17 = sshll.u32 %s195_s16, 4  ;;  %s164_s21 = scalar_lea.hbm %s270_s2, 192  ;;  %s46_s17 = int_to_ptr.vmem [resolvable:$true] %s45_s17 }
  0x2c   :  { %p141_p8 = scmp.ne.s32.totalorder %s88_s15, %s164_s21  ;;  %s142_s24 = scalar_lea.hbm %s270_s2, 256 }
  0x2d   :  { %p143_p9 = scmp.lt.u32.totalorder %s88_s15, %s270_s2  ;;  %p144_p10 = scmp.lt.u32.totalorder %s142_s24, %s164_s21 }
  0x2e   :  { %p146_p12 = scmp.lt.u32.totalorder %s164_s21, %s88_s15 }
  0x2f   :  { %p145_p11 = por %p144_p10, %p143_p9 }
  0x31   :  { %p147_p13 = por %p146_p12, %p145_p11 }
  0x33   :  { %p148_p0 = pnand %p147_p13, %p141_p8 }
  0x35   :  { %151 = shalt.err (!%p148_p0)
}
  0x36   :  { %s152_s0 = scalar_lea.vmem %s46_s17, 64  ;;  %p157_p2 = scmp.lt.s32.totalorder %s46_s17, %s46_s17 }
  0x37   :  { %p153_p1 = scmp.ne.s32.totalorder %s46_s17, %s152_s0  ;;  %p158_p3 = scmp.lt.s32.totalorder %s152_s0, %s152_s0 }
  0x39   :  { %p159_p4 = por %p158_p3, %p157_p2 }
  0x3b   :  { %p160_p5 = pnand %p159_p4, %p153_p1 }
  0x3d   :  { %163 = shalt.err (!%p160_p5)
}
  0x3e   :  { %48 = dma.hbm_to_vmem [thread:$0]  %s88_s15, 64, %s46_s17, [#allocation6]  }
  0x3f   :  { %187 = dma.done.wait [#allocation3], 64  }
  0x40   :  { %188 = vsyncadd [#allocation3], 4294967232 }
  0x41   :  { %189 = dma.done.wait [#allocation6], 128  }
  0x42   :  { %190 = vsyncadd [#allocation6], 4294967168  ;;  %v62_v0 = vld [vmem:[#allocation2] sm:$0xf]  ;;  %v63_v1 = vld [vmem:[#allocation5] sm:$0xf] }
  0x43   :  { %v64_v2 = vld [vmem:[#allocation7] sm:$0xf]  ;;  %v65_v3 = vmul.f32 0.299, %v62_v0  ;;  %v66_v4 = vmul.f32 0.587, %v63_v1 }
  0x44   :  { %v68_v5 = vmul.f32 0.114, %v64_v2  ;;  %s196_s2 = smov [#allocation8]  }
  0x45   :  { %s77_s18 = sshll.u32 %s196_s2, 4  ;;  %v67_v6 = vadd.f32 %v66_v4, %v65_v3  ;;  %s78_s18 = int_to_ptr.vmem [resolvable:$true] %s77_s18 }
  0x46   :  { %s165_s27 = scalar_lea.vmem %s78_s18, 64  ;;  %p170_p7 = scmp.lt.s32.totalorder %s78_s18, %s78_s18 }
  0x47   :  { %v69_v7 = vadd.f32 %v68_v5, %v67_v6  ;;  %p166_p6 = scmp.ne.s32.totalorder %s78_s18, %s165_s27  ;;  %p171_p8 = scmp.lt.s32.totalorder %s165_s27, %s165_s27 }
  0x49   :  { %70 = vst [vmem:[#allocation8] sm:$0xf] %v69_v7  ;;  %p172_p9 = por %p171_p8, %p170_p7 }
  0x4b   :  { %p173_p10 = pnand %p172_p9, %p166_p6 }
  0x4d   :  { %176 = shalt.err (!%p173_p10)
}
  0x4e   :  { %s177_s30 = scalar_lea.hbm %s271_s3, 64 }
  0x4f   :  { %p178_p11 = scmp.ne.s32.totalorder %s271_s3, %s177_s30  ;;  %p181_p12 = scmp.lt.u32.totalorder %s177_s30, %s271_s3 }
  0x51   :  { %p183_p13 = pnand %p181_p12, %p178_p11 }
  0x53   :  { %186 = shalt.err (!%p183_p13)
}
  0x54   :  { %80 = dma.vmem_to_hbm [thread:$0]  %s78_s18, 64, %s271_s3, [#allocation4]  }
  0x55   :  { %191 = dma.done.wait [#allocation4], 64  }
  0x56   :  { %192 = vsyncadd [#allocation4], 4294967232 }
  0x57   :  { %84 = vsyncpa [#allocation3], 1 }
  0x58   :  { %85 = vsyncpa [#allocation6], 1 }
  0x59   :  { %86 = vsyncpa [#allocation4], 1 }

</bundles_post_ra>
